<compile_context>
chip_gen: v7x
topology: tpu7x:2x2x1
jax: 0.10.0
libtpu: 0.0.40
codegen_flags: <defaults>
</compile_context>

<pallas_src>
import jax
import jax.numpy as jnp
from jax.experimental import pallas as pl
from jax.experimental.pallas import tpu as pltpu


def _round_up(v, m):
    return (v + m - 1) // m * m


def _sublane_min(dtype):
    # f32 -> 8, bf16 -> 16, int8/fp8 -> 32 (sub-32-bit dtypes pack sublanes).
    return max(8, 32 // jnp.dtype(dtype).itemsize)


def _pick_tile(dim, align, cap):
    """Largest tile <= cap that is a multiple of `align`; prefer one that
    divides the aligned extent exactly so no edge padding is needed."""
    aligned = _round_up(dim, align)
    if aligned <= cap:
        return aligned
    for cand in range(cap, cap // 2 - 1, -align):
        if cand >= align and aligned % cand == 0:
            return cand
    return cap  # fall back: pad the edge tile


def _vmem_capacity_bytes():
    try:
        info = pltpu.get_tpu_info()
        return int(getattr(info, "vmem_capacity_bytes", 64 * 1024 * 1024))
    except Exception:
        return 64 * 1024 * 1024  # conservative (v7x per-TC size)


def _tile_caps():
    """Generation-aware tile caps + explicit scoped-VMEM limit."""
    vmem = _vmem_capacity_bytes()
    if vmem >= 96 * 1024 * 1024:
        # v5e / v6e: 128 MiB physical VMEM -> big tiles (~20 MiB live).
        return 512, 1024, 1024, 96 * 1024 * 1024
    # v7x: 64 MiB physical per TensorCore -> stay well under.
    return 256, 512, 1024, 48 * 1024 * 1024


# ----------------------------------------------------------------------------
# Kernels
# ----------------------------------------------------------------------------
def _linear_kernel_single_block(x_ref, w_ref, b_ref, o_ref):
    """Whole problem in one VMEM block: y = x @ w + b."""
    o_ref[...] = (
        jnp.dot(x_ref[...], w_ref[...], preferred_element_type=jnp.float32)
        + b_ref[...]
    ).astype(o_ref.dtype)


def _linear_kernel_f32_out(x_ref, w_ref, b_ref, o_ref):
    """Tiled matmul accumulating directly into the resident f32 output block.
    Grid: (M//tm, N//tn, K//tk); K is the last ('arbitrary') reduction axis."""
    k = pl.program_id(2)
    part = jnp.dot(x_ref[...], w_ref[...], preferred_element_type=jnp.float32)

    @pl.when(k == 0)
    def _first():
        o_ref[...] = part  # direct write: no zero-fill, no read-modify-write

    @pl.when(k > 0)
    def _accum():
        o_ref[...] += part

    @pl.when(k == pl.num_programs(2) - 1)
    def _bias():
        o_ref[...] += b_ref[...]  # bias added once per output tile


def _linear_kernel_scratch_acc(x_ref, w_ref, b_ref, o_ref, acc_ref):
    """Tiled matmul with a separate f32 accumulator (for sub-f32 outputs)."""
    k = pl.program_id(2)
    part = jnp.dot(x_ref[...], w_ref[...], preferred_element_type=jnp.float32)

    @pl.when(k == 0)
    def _first():
        acc_ref[...] = part

    @pl.when(k > 0)
    def _accum():
        acc_ref[...] += part

    @pl.when(k == pl.num_programs(2) - 1)
    def _finalize():
        o_ref[...] = (acc_ref[...] + b_ref[...]).astype(o_ref.dtype)


# ----------------------------------------------------------------------------
# Wrappers
# ----------------------------------------------------------------------------
def prepare_linear_params(weight, bias):
    """Hoisted, once-per-parameter setup: torch nn.Linear (OUT, IN) weight ->
    (IN, OUT) layout (contraction on sublanes, OUT on lanes), bias -> (1, OUT)."""
    return jnp.asarray(weight).T, jnp.asarray(bias).reshape(1, -1)


def linear_pallas(x, weight_t, bias2d, *, use_bf16=False):
    """y = x @ weight_t + bias, with weight_t already in (IN, OUT) layout."""
    B, IN = x.shape
    k_dim, OUT = weight_t.shape
    assert k_dim == IN and bias2d.shape == (1, OUT)

    # ---- Fast path: whole problem fits comfortably in VMEM as one block.
    # No padding, no transpose, no slice, no grid (kills per-call overhead for
    # the literal 8x2 @ 2x2 module size).
    if (B * IN + IN * OUT + B * OUT + OUT) <= (1 << 18):
        try:
            vmem_spec = pl.BlockSpec(memory_space=pltpu.MemorySpace.VMEM)
            nbytes = (
                x.size * x.dtype.itemsize
                + weight_t.size * weight_t.dtype.itemsize
                + bias2d.size * bias2d.dtype.itemsize
                + B * OUT * x.dtype.itemsize
            )
            return pl.pallas_call(
                _linear_kernel_single_block,
                out_shape=jax.ShapeDtypeStruct((B, OUT), x.dtype),
                in_specs=[vmem_spec, vmem_spec, vmem_spec],
                out_specs=vmem_spec,
                cost_estimate=pl.CostEstimate(
                    flops=2 * B * IN * OUT,
                    transcendentals=0,
                    bytes_accessed=nbytes,
                ),
            )(x, weight_t, bias2d)
        except Exception:
            pass  # fall back to the tiled path below

    # ---- Tiled path (real M/N/K grid).
    out_dtype = x.dtype
    cdt = jnp.bfloat16 if use_bf16 else x.dtype
    xin = x.astype(cdt)
    win = weight_t.astype(cdt)

    cap_m, cap_n, cap_k, vmem_limit = _tile_caps()
    sub = _sublane_min(cdt)

    tm = _pick_tile(B, sub, cap_m)
    tk = _pick_tile(IN, 128, cap_k)
    tn = _pick_tile(OUT, 128, cap_n)

    M, K, N = _round_up(B, tm), _round_up(IN, tk), _round_up(OUT, tn)

    # K padding is mandatory for reduction correctness (OOB reads are not
    # zero-filled); M/N edge padding (if any) is sliced off afterwards.
    # Pads are emitted only when a dim actually needs them.
    if (M, K) != (B, IN):
        xin = jnp.pad(xin, ((0, M - B), (0, K - IN)))
    if (K, N) != (IN, OUT):
        win = jnp.pad(win, ((0, K - IN), (0, N - OUT)))
    b_p = bias2d if N == OUT else jnp.pad(bias2d, ((0, 0), (0, N - OUT)))

    grid = (M // tm, N // tn, K // tk)

    direct_f32 = out_dtype == jnp.float32
    kernel = _linear_kernel_f32_out if direct_f32 else _linear_kernel_scratch_acc
    scratch = [] if direct_f32 else [pltpu.VMEM((tm, tn), jnp.float32)]

    in_itemsize = jnp.dtype(cdt).itemsize
    out_itemsize = jnp.dtype(out_dtype).itemsize
    cost = pl.CostEstimate(
        flops=2 * M * N * K,
        transcendentals=0,
        bytes_accessed=(M * K + K * N) * in_itemsize + (M * N + N) * out_itemsize,
    )

    out = pl.pallas_call(
        kernel,
        out_shape=jax.ShapeDtypeStruct((M, N), out_dtype),
        grid_spec=pltpu.PrefetchScalarGridSpec(
            num_scalar_prefetch=0,
            grid=grid,
            in_specs=[
                pl.BlockSpec((tm, tk), lambda i, j, k: (i, k)),  # x tile
                pl.BlockSpec((tk, tn), lambda i, j, k: (k, j)),  # W^T tile
                pl.BlockSpec((1, tn), lambda i, j, k: (0, j)),   # bias tile
            ],
            out_specs=pl.BlockSpec((tm, tn), lambda i, j, k: (i, j)),
            scratch_shapes=scratch,
        ),
        compiler_params=pltpu.CompilerParams(
            dimension_semantics=("parallel", "parallel", "arbitrary"),
            vmem_limit_bytes=vmem_limit,
        ),
        cost_estimate=cost,
    )(xin, win, b_p)

    if (M, N) != (B, OUT):
        out = out[:B, :OUT]
    return out


if __name__ == "__main__":
    key = jax.random.PRNGKey(0)
    k_x, k_w, k_b = jax.random.split(key, 3)

    # Module-consistent small shapes: Linear(2, 2) applied to a batch of 8.
    IN_FEATURES, OUT_FEATURES = 2, 2
    BATCH = 8

    # Deterministic params (uniform, same bound as torch.nn.Linear default).
    bound = 1.0 / (IN_FEATURES ** 0.5)
    weight = jax.random.uniform(
        k_w, (OUT_FEATURES, IN_FEATURES), jnp.float32, -bound, bound)
    bias = jax.random.uniform(
        k_b, (OUT_FEATURES,), jnp.float32, -bound, bound)
    x = jax.random.normal(k_x, (BATCH, IN_FEATURES), jnp.float32)

    # Parameter prep (transpose + bias reshape) hoisted out of the call path.
    w_t, b2 = prepare_linear_params(weight, bias)

    y = linear_pallas(x, w_t, b2)
    jax.block_until_ready(y)
    y_ref = x @ weight.T + bias
    assert y.shape == y_ref.shape, "shape mismatch vs reference"
    assert jnp.allclose(y, y_ref, atol=1e-5, rtol=1e-5), "mismatch vs reference"

    # Also exercise the tiled multi-K path (same kernel code at realistic sizes).
    k_x2, k_w2, k_b2 = jax.random.split(jax.random.PRNGKey(1), 3)
    B2, IN2, OUT2 = 384, 2048, 256
    w2 = jax.random.normal(k_w2, (OUT2, IN2), jnp.float32) * 0.02
    b2v = jax.random.normal(k_b2, (OUT2,), jnp.float32)
    x2 = jax.random.normal(k_x2, (B2, IN2), jnp.float32)
    w2_t, b2_2 = prepare_linear_params(w2, b2v)

    y2 = linear_pallas(x2, w2_t, b2_2)
    jax.block_until_ready(y2)
    y2_ref = jnp.dot(x2, w2.T, precision=jax.lax.Precision.HIGHEST) + b2v
    assert jnp.allclose(y2, y2_ref, atol=1e-3, rtol=1e-3), "tiled path mismatch"

    print("KERNEL_OK")
</pallas_src>

<mosaic_0001>
module attributes {stable_mosaic.version = 11 : i64} {
  func.func @_linear_kernel_single_block(%arg0: memref<8x2xf32, #tpu.memory_space<vmem>>, %arg1: memref<2x2xf32, #tpu.memory_space<vmem>>, %arg2: memref<1x2xf32, #tpu.memory_space<vmem>>, %arg3: memref<8x2xf32, #tpu.memory_space<vmem>>) attributes {dimension_semantics = [], scalar_prefetch = 0 : i64, scratch_operands = 0 : i64, tpu.core_type = #tpu.core_type<tc>} {
    %c0 = arith.constant 0 : index
    %c0_0 = arith.constant 0 : index
    %0 = vector.load %arg0[%c0, %c0_0] : memref<8x2xf32, #tpu.memory_space<vmem>>, vector<8x2xf32>
    %c0_1 = arith.constant 0 : index
    %c0_2 = arith.constant 0 : index
    %1 = vector.load %arg1[%c0_1, %c0_2] : memref<2x2xf32, #tpu.memory_space<vmem>>, vector<2x2xf32>
    %cst = arith.constant dense<0.000000e+00> : vector<8x2xf32>
    %2 = tpu.matmul %0, %1, %cst {dimension_numbers = #tpu.dot_dimension_numbers<[1], [0], [0], [1], [0, 0, 1, 1], [], []>} : vector<8x2xf32>, vector<2x2xf32>, vector<8x2xf32> -> vector<8x2xf32>
    %c0_3 = arith.constant 0 : index
    %c0_4 = arith.constant 0 : index
    %3 = vector.load %arg2[%c0_3, %c0_4] : memref<1x2xf32, #tpu.memory_space<vmem>>, vector<1x2xf32>
    %4 = vector.broadcast %3 : vector<1x2xf32> to vector<8x2xf32>
    %5 = arith.addf %2, %4 : vector<8x2xf32>
    %c0_5 = arith.constant 0 : index
    %c0_6 = arith.constant 0 : index
    %6 = vector.load %arg3[%c0_5, %c0_6] : memref<8x2xf32, #tpu.memory_space<vmem>>, vector<8x2xf32>
    tpu.vector_store %arg3[%c0_5, %c0_6], %5 {strides = array<i32>} : memref<8x2xf32, #tpu.memory_space<vmem>>, vector<8x2xf32>,
    return
  }
}

module attributes {stable_mosaic.version = 11 : i64} {
  func.func @_linear_kernel_f32_out(%arg0: i32, %arg1: i32, %arg2: i32, %arg3: memref<8x128xf32, #tpu.memory_space<vmem>>, %arg4: memref<128x128xf32, #tpu.memory_space<vmem>>, %arg5: memref<1x128xf32, #tpu.memory_space<vmem>>, %arg6: memref<8x128xf32, #tpu.memory_space<vmem>>) attributes {dimension_semantics = [#tpu.dimension_semantics<parallel>, #tpu.dimension_semantics<parallel>, #tpu.dimension_semantics<arbitrary>], iteration_bounds = array<i64: 1, 1, 1>, scalar_prefetch = 0 : i64, scratch_operands = 0 : i64, tpu.core_type = #tpu.core_type<tc>, window_params = [{transform_indices = @transform_0, window_bounds = array<i64: 8, 128>}, {transform_indices = @transform_1, window_bounds = array<i64: 128, 128>}, {transform_indices = @transform_2, window_bounds = array<i64: 1, 128>}, {transform_indices = @transform_3, window_bounds = array<i64: 8, 128>}]} {
    %c0 = arith.constant 0 : index
    %c0_0 = arith.constant 0 : index
    %0 = vector.load %arg3[%c0, %c0_0] : memref<8x128xf32, #tpu.memory_space<vmem>>, vector<8x128xf32>
    %c0_1 = arith.constant 0 : index
    %c0_2 = arith.constant 0 : index
    %1 = vector.load %arg4[%c0_1, %c0_2] : memref<128x128xf32, #tpu.memory_space<vmem>>, vector<128x128xf32>
    %cst = arith.constant dense<0.000000e+00> : vector<8x128xf32>
    %2 = tpu.matmul %0, %1, %cst {dimension_numbers = #tpu.dot_dimension_numbers<[1], [0], [0], [1], [0, 0, 1, 1], [], []>} : vector<8x128xf32>, vector<128x128xf32>, vector<8x128xf32> -> vector<8x128xf32>
    %c0_i32 = arith.constant 0 : i32
    %3 = arith.cmpi eq, %arg2, %c0_i32 : i32
    %4 = arith.extui %3 : i1 to i32
    %c0_i32_3 = arith.constant 0 : i32
    %5 = arith.cmpi ne, %4, %c0_i32_3 : i32
    scf.if %5 {
      %c0_8 = arith.constant 0 : index
      %c0_9 = arith.constant 0 : index
      %12 = vector.load %arg6[%c0_8, %c0_9] : memref<8x128xf32, #tpu.memory_space<vmem>>, vector<8x128xf32>
      tpu.vector_store %arg6[%c0_8, %c0_9], %2 {strides = array<i32>} : memref<8x128xf32, #tpu.memory_space<vmem>>, vector<8x128xf32>,
    } else {
    }
    %c0_i32_4 = arith.constant 0 : i32
    %6 = arith.cmpi sgt, %arg2, %c0_i32_4 : i32
    %7 = arith.extui %6 : i1 to i32
    %c0_i32_5 = arith.constant 0 : i32
    %8 = arith.cmpi ne, %7, %c0_i32_5 : i32
    scf.if %8 {
      %c0_8 = arith.constant 0 : index
      %c0_9 = arith.constant 0 : index
      %12 = vector.load %arg6[%c0_8, %c0_9] : memref<8x128xf32, #tpu.memory_space<vmem>>, vector<8x128xf32>
      %13 = arith.addf %12, %2 : vector<8x128xf32>
      %c0_10 = arith.constant 0 : index
      %c0_11 = arith.constant 0 : index
      %14 = vector.load %arg6[%c0_10, %c0_11] : memref<8x128xf32, #tpu.memory_space<vmem>>, vector<8x128xf32>
      tpu.vector_store %arg6[%c0_10, %c0_11], %13 {strides = array<i32>} : memref<8x128xf32, #tpu.memory_space<vmem>>, vector<8x128xf32>,
    } else {
    }
    %c0_i32_6 = arith.constant 0 : i32
    %9 = arith.cmpi eq, %arg2, %c0_i32_6 : i32
    %10 = arith.extui %9 : i1 to i32
    %c0_i32_7 = arith.constant 0 : i32
    %11 = arith.cmpi ne, %10, %c0_i32_7 : i32
    scf.if %11 {
      %c0_8 = arith.constant 0 : index
      %c0_9 = arith.constant 0 : index
      %12 = vector.load %arg6[%c0_8, %c0_9] : memref<8x128xf32, #tpu.memory_space<vmem>>, vector<8x128xf32>
      %c0_10 = arith.constant 0 : index
      %c0_11 = arith.constant 0 : index
      %13 = vector.load %arg5[%c0_10, %c0_11] : memref<1x128xf32, #tpu.memory_space<vmem>>, vector<1x128xf32>
      %14 = vector.broadcast %13 : vector<1x128xf32> to vector<8x128xf32>
      %15 = arith.addf %12, %14 : vector<8x128xf32>
      %c0_12 = arith.constant 0 : index
      %c0_13 = arith.constant 0 : index
      %16 = vector.load %arg6[%c0_12, %c0_13] : memref<8x128xf32, #tpu.memory_space<vmem>>, vector<8x128xf32>
      tpu.vector_store %arg6[%c0_12, %c0_13], %15 {strides = array<i32>} : memref<8x128xf32, #tpu.memory_space<vmem>>, vector<8x128xf32>,
    } else {
    }
    return
  }
  func.func @transform_0(%arg0: i32, %arg1: i32, %arg2: i32) -> (i32, i32) {
    %c0_i32 = arith.constant 0 : i32
    return %arg0, %arg2 : i32, i32
  }
  func.func @transform_1(%arg0: i32, %arg1: i32, %arg2: i32) -> (i32, i32) {
    %c0_i32 = arith.constant 0 : i32
    return %arg2, %arg1 : i32, i32
  }
  func.func @transform_2(%arg0: i32, %arg1: i32, %arg2: i32) -> (i32, i32) {
    %c0_i32 = arith.constant 0 : i32
    %c0_i32_0 = arith.constant 0 : i32
    return %c0_i32, %arg1 : i32, i32
  }
  func.func @transform_3(%arg0: i32, %arg1: i32, %arg2: i32) -> (i32, i32) {
    %c0_i32 = arith.constant 0 : i32
    return %arg0, %arg1 : i32, i32
  }
}

</mosaic_0001>

<bundles_post_ra>
// kernel: tpu_custom_call.1
= control target key start
LH: loop header
LB: loop body
LE: loop exit
PB: predicated region body
PF: predicated region fallthrough
CT: control target
= control target key end

     0   :  { %vm27_vm0 = vcmask 1041408   ;;  %vm23_vm1 = vcmask 15360   ;;  %v118_v0 = vmov 0.0   ;;  %vm119_vm2 = vmmov 0   ;;  %s152_s1 = inlined_call_operand.vmem [shape: f32[2,2], index: 1, kind: input, shape index: {}]   ;;  %s153_s0 = inlined_call_operand.vmem [shape: f32[8,2], index: 0, kind: input, shape index: {}]   ;;  %s154_s2 = inlined_call_operand.vmem [shape: f32[1,2], index: 2, kind: input, shape index: {}]   ;;  %s155_s3 = inlined_call_operand.vmem [shape: f32[8,2], index: 3, kind: output, shape index: {}]  }
   0x1   :  { %111 = vmatprep.subr.mxu0 %v118_v0  ;;  %v15_v1 = vld [vmem:[%s152_s1] sm:$0x3]  ;;  %113 = vmatprep.mubr.msk.f32.mxu0 %vm119_vm2, %v118_v0 }
   0x2   :  { %v14_v2 = vld [vmem:[%s153_s0] sm:$0xff]  ;;  %112 = vmatpush3.msk.msra.mxu0 %vm27_vm0, %v15_v1 }
   0x3   :  { %114 = vmatmul.mubr.msk.f32.vlgmr.msra.gmra.mrb[0].mxu0 %vm23_vm1, %v14_v2  ;;  %v106_v3 = vld [vmem:[%s154_s2] ss:$0 sm:$0xff] }
  0xd6   :  { %v97_v4 = vpop.f32.mrb[0].mxu0 }
  0xd7   :  { %v98_v5 = vadd.f32 %v106_v3, %v97_v4  ;;  %v115_v6 = vpop.f32.mrb[1].mxu0 }
  0xd9   :  { %101 = vst.msk [vmem:[%s155_s3] sm:$0xff] %vm23_vm1, %v98_v5 }

// kernel: tpu_custom_call.1
= control target key start
LH: loop header
LB: loop body
LE: loop exit
PB: predicated region body
PF: predicated region fallthrough
CT: control target
= control target key end

     0   :  { %8 = vsyncpa [#allocation3], 0  ;;  %s400_s0 = inlined_call_operand.hbm [shape: f32[8,128], index: 0, kind: input, shape index: {}]   ;;  %s401_s1 = inlined_call_operand.hbm [shape: f32[128,128], index: 1, kind: input, shape index: {}]   ;;  %s402_s2 = inlined_call_operand.vmem [shape: f32[1,128], index: 2, kind: input, shape index: {}]   ;;  %s403_s3 = inlined_call_operand.hbm [shape: f32[8,128], index: 3, kind: output, shape index: {}]  }
   0x1   :  { %9 = vsyncpa [#allocation6], 0 }
   0x2   :  { %10 = vsyncpa [#allocation4], 0  ;;  %s326_s12 = smov [#allocation2]   ;;  %s327_s14 = smov [#allocation5]  }
   0x3   :  { %s17_s13 = sshll.u32 %s326_s12, 4  ;;  %s26_s15 = sshll.u32 %s327_s14, 4  ;;  %s18_s13 = int_to_ptr.vmem [resolvable:$true] %s17_s13  ;;  %s354_s15 = int_to_ptr.vmem [resolvable:$true] %s26_s15 }
   0x4   :  { %s254_s18 = scalar_lea.hbm %s400_s0, 128 }
   0x5   :  { %p255_p0 = scmp.ne.s32.totalorder %s400_s0, %s254_s18  ;;  %p258_p1 = scmp.lt.u32.totalorder %s254_s18, %s400_s0 }
   0x7   :  { %p260_p2 = pnand %p258_p1, %p255_p0 }
   0x9   :  { %263 = shalt.err (!%p260_p2)
}
   0xa   :  { %s264_s23 = scalar_lea.vmem %s18_s13, 128  ;;  %p269_p4 = scmp.lt.s32.totalorder %s18_s13, %s18_s13 }
   0xb   :  { %p265_p3 = scmp.ne.s32.totalorder %s18_s13, %s264_s23  ;;  %p270_p5 = scmp.lt.s32.totalorder %s264_s23, %s264_s23 }
   0xd   :  { %p271_p6 = por %p270_p5, %p269_p4 }
   0xf   :  { %p272_p7 = pnand %p271_p6, %p265_p3 }
  0x11   :  { %275 = shalt.err (!%p272_p7)
}
  0x12   :  { %20 = dma.hbm_to_vmem [thread:$0]  %s400_s0, 128, %s18_s13, [#allocation3]  }
  0x13   :  { %s276_s28 = scalar_lea.hbm %s401_s1, 2048 }
  0x14   :  { %p277_p8 = scmp.ne.s32.totalorder %s401_s1, %s276_s28  ;;  %p280_p9 = scmp.lt.u32.totalorder %s276_s28, %s401_s1 }
  0x16   :  { %p282_p10 = pnand %p280_p9, %p277_p8 }
  0x18   :  { %285 = shalt.err (!%p282_p10)
}
  0x19   :  { %s286_s6 = scalar_lea.vmem %s354_s15, 2048  ;;  %p291_p12 = scmp.lt.s32.totalorder %s354_s15, %s354_s15 }
  0x1a   :  { %p287_p11 = scmp.ne.s32.totalorder %s354_s15, %s286_s6  ;;  %p292_p13 = scmp.lt.s32.totalorder %s286_s6, %s286_s6 }
  0x1c   :  { %p293_p0 = por %p292_p13, %p291_p12 }
  0x1e   :  { %p294_p1 = pnand %p293_p0, %p287_p11 }
  0x20   :  { %297 = shalt.err (!%p294_p1)
}
  0x21   :  { %s328_s0 = smov 128   ;;  %s329_s7 = smov 8  }
  0x22   :  { %32 = dma.hbm_to_vmem [thread:$0]  %s401_s1, 2048, %s354_s15, [#allocation6], %s328_s0, %s328_s0, %s329_s7  }
  0x23   :  { %320 = dma.done.wait [#allocation3], 128  }
  0x24   :  { %321 = vsyncadd [#allocation3], 4294967168 }
  0x25   :  { %322 = dma.done.wait [#allocation6], 2048  }
  0x26   :  { %323 = vsyncadd [#allocation6], 4294965248  ;;  %v330_v0 = vmov 0.0|0.0   ;;  %vm331_vm0 = vmmov 0   ;;  %v332_v1 = vmov 0.0   ;;  %v42_v2 = vld [vmem:[#allocation5] sm:$0xff] }
  0x27   :  { %222 = vmatprep.subr.bf16.mxu0 %v330_v0  ;;  %219 = vmatprep.mubr.msk.f32.mxu0 %vm331_vm0, %v332_v1  ;;  %v43_v3 = vld [vmem:[#allocation5 + $0x8] sm:$0xff]  ;;  %v44_v4 = vld [vmem:[#allocation5 + $0x10] sm:$0xff]  ;;  %v45_v6 = vld [vmem:[#allocation5 + $0x18] sm:$0xff]  ;;  %s333_s11 = smov [#allocation7]  }
  0x28   :  { %v223_v5 = vpack.c.bf16 %v43_v3, %v42_v2  ;;  %v226_v7 = vpack.c.bf16 %v45_v6, %v44_v4  ;;  %v46_v8 = vld [vmem:[#allocation5 + $0x20] sm:$0xff]  ;;  %v47_v9 = vld [vmem:[#allocation5 + $0x28] sm:$0xff]  ;;  %v48_v11 = vld [vmem:[#allocation5 + $0x30] sm:$0xff]  ;;  %s159_s12 = sshll.u32 %s333_s11, 4  ;;  %s160_s12 = int_to_ptr.vmem [resolvable:$true] %s159_s12 }
  0x29   :  { %v229_v10 = vpack.c.bf16 %v47_v9, %v46_v8  ;;  %v49_v12 = vld [vmem:[#allocation5 + $0x38] sm:$0xff]  ;;  %v50_v14 = vld [vmem:[#allocation5 + $0x40] sm:$0xff]  ;;  %v51_v15 = vld [vmem:[#allocation5 + $0x48] sm:$0xff]  ;;  %s298_s13 = scalar_lea.vmem %s160_s12, 128  ;;  %p303_p3 = scmp.lt.s32.totalorder %s160_s12, %s160_s12 }
  0x2a   :  { %224 = vmatpush3.bf16.msra.mxu0 %v223_v5  ;;  %v232_v13 = vpack.c.bf16 %v49_v12, %v48_v11  ;;  %v235_v16 = vpack.c.bf16 %v51_v15, %v50_v14  ;;  %v52_v17 = vld [vmem:[#allocation5 + $0x50] sm:$0xff]  ;;  %v53_v18 = vld [vmem:[#allocation5 + $0x58] sm:$0xff]  ;;  %v54_v20 = vld [vmem:[#allocation5 + $0x60] sm:$0xff]  ;;  %p299_p2 = scmp.ne.s32.totalorder %s160_s12, %s298_s13  ;;  %p304_p4 = scmp.lt.s32.totalorder %s298_s13, %s298_s13 }
  0x2b   :  { %225 = vmatprep.subr.bf16.mxu0 %v330_v0  ;;  %v238_v19 = vpack.c.bf16 %v53_v18, %v52_v17  ;;  %v55_v21 = vld [vmem:[#allocation5 + $0x68] sm:$0xff]  ;;  %v56_v23 = vld [vmem:[#allocation5 + $0x70] sm:$0xff]  ;;  %v57_v24 = vld [vmem:[#allocation5 + $0x78] sm:$0xff] }
  0x2c   :  { %v241_v22 = vpack.c.bf16 %v55_v21, %v54_v20  ;;  %v244_v25 = vpack.c.bf16 %v57_v24, %v56_v23  ;;  %v41_v26 = vld [vmem:[#allocation2] sm:$0xff]  ;;  %p305_p5 = por %p304_p4, %p303_p3 }
  0x2d   :  { %v169_v27 = vld [vmem:[%s402_s2] ss:$0 sm:$0xff] }
  0x2e   :  { %227 = vmatpush3.bf16.msra.mxu0 %v226_v7  ;;  %p306_p6 = pnand %p305_p5, %p299_p2 }
  0x2f   :  { %228 = vmatprep.subr.bf16.mxu0 %v330_v0 }
  0x32   :  { %230 = vmatpush3.bf16.msra.mxu0 %v229_v10 }
  0x33   :  { %231 = vmatprep.subr.bf16.mxu0 %v330_v0 }
  0x36   :  { %233 = vmatpush3.bf16.msra.mxu0 %v232_v13 }
  0x37   :  { %234 = vmatprep.subr.bf16.mxu0 %v330_v0 }
  0x3a   :  { %236 = vmatpush3.bf16.msra.mxu0 %v235_v16 }
  0x3b   :  { %237 = vmatprep.subr.bf16.mxu0 %v330_v0 }
  0x3e   :  { %239 = vmatpush3.bf16.msra.mxu0 %v238_v19 }
  0x3f   :  { %240 = vmatprep.subr.bf16.mxu0 %v330_v0 }
  0x42   :  { %242 = vmatpush3.bf16.msra.mxu0 %v241_v22 }
  0x43   :  { %243 = vmatprep.subr.bf16.mxu0 %v330_v0 }
  0x46   :  { %245 = vmatpush3.bf16.msra.mxu0 %v244_v25 }
  0x49   :  { %220 = vmatmul.mubr.f32.vlgmr.msra.gmra.mrb[0].mxu0 %v41_v26 }
 0x11c   :  { %v124_v28 = vpop.f32.mrb[0].mxu0 }
 0x11d   :  { %v221_v29 = vpop.f32.mrb[1].mxu0  ;;  %v151_v30 = vadd.f32 %v169_v27, %v124_v28 }
 0x11f   :  { %152 = vst [vmem:[#allocation7] sm:$0xff] %v151_v30 }
 0x120   :  { %309 = shalt.err (!%p306_p6)
}
 0x121   :  { %s310_s16 = scalar_lea.hbm %s403_s3, 128 }
 0x122   :  { %p311_p7 = scmp.ne.s32.totalorder %s403_s3, %s310_s16  ;;  %p314_p8 = scmp.lt.u32.totalorder %s310_s16, %s403_s3 }
 0x124   :  { %p316_p9 = pnand %p314_p8, %p311_p7 }
 0x126   :  { %319 = shalt.err (!%p316_p9)
}
 0x127   :  { %162 = dma.vmem_to_hbm [thread:$0]  %s160_s12, 128, %s403_s3, [#allocation4]  }
 0x128   :  { %324 = dma.done.wait [#allocation4], 128  }
 0x129   :  { %325 = vsyncadd [#allocation4], 4294967168 }
 0x12a   :  { %166 = vsyncpa [#allocation3], 1 }
 0x12b   :  { %167 = vsyncpa [#allocation6], 1 }
 0x12c   :  { %168 = vsyncpa [#allocation4], 1 }

</bundles_post_ra>
